<compile_context>
chip_gen: v7x
topology: tpu7x:2x2x1
jax: 0.10.0
libtpu: 0.0.40
codegen_flags: <defaults>
</compile_context>

<pallas_src>
import functools

import jax
import jax.numpy as jnp
from jax.experimental import pallas as pl
from jax.experimental.pallas import tpu as pltpu


def _round_up(x, m):
    return (x + m - 1) // m * m


def _cnn_pool_kernel(xemb_ref, wconv_ref, bconv_ref, out_ref, *, kernel_size, l_out):
    """Fused conv1d (valid, stride 1) + max-over-time + bias + ReLU for one batch tile.

    xemb_ref : (TB, L_pad, E)  bf16  embedded tokens (batch tile)
    wconv_ref: (K, E, F_pad)   bf16  conv weight (PyTorch (F,E,K) permuted, zero-padded)
    bconv_ref: (1, F_pad)      f32   conv bias (zero-padded)
    out_ref  : (TB, F_pad)     f32   pooled + ReLU'd features (lane-dense, F_pad % 128 == 0)
    """
    x = xemb_ref[...]                                   # (TB, L_pad, E) bf16
    tb, l_pad, e = x.shape
    f_pad = wconv_ref.shape[-1]
    n_rows = tb * l_pad

    # One wide-M MXU matmul per conv tap: (TB*L_pad, E) @ (E, F_pad), f32 accumulate.
    x2 = x.reshape(n_rows, e)
    acc = jnp.dot(x2, wconv_ref[0], preferred_element_type=jnp.float32)
    for k in range(1, kernel_size):                     # K is static & tiny -> unrolled
        zk = jnp.dot(x2, wconv_ref[k], preferred_element_type=jnp.float32)
        # Align tap k: acc[b, t] += z_k[b, t + k].  Rolling the flattened f32 result
        # along the sublane axis (XLU, otherwise idle) replaces the sublane-unaligned
        # slice x[:, k:k+L_out, :].  Wrapped-around rows only land at time steps
        # t >= L_pad - k >= l_out, which are masked below, so the wrap (including any
        # cross-batch contamination in the flattened view) is harmless.
        acc = acc + pltpu.roll(zk, shift=n_rows - k, axis=0)

    # Pool over (valid) time FIRST, then bias + ReLU on the pooled tensor:
    #   relu(max_t y_t + b) == max_t relu(y_t + b)   (monotonicity).
    # Invalid/padded time steps must be masked with -inf (0 is not safe pre-ReLU).
    acc = acc.reshape(tb, l_pad, f_pad)
    t_idx = jax.lax.broadcasted_iota(jnp.int32, (tb, l_pad, f_pad), 1)
    acc = jnp.where(t_idx < l_out, acc, -jnp.inf)
    pooled = jnp.max(acc, axis=1)                       # (TB, F_pad)
    pooled = jnp.maximum(pooled + bconv_ref[...], 0.0)  # bias + ReLU after pooling
    out_ref[...] = pooled.astype(out_ref.dtype)


def _pick_batch_tile(l_pad, e, f_pad, budget_bytes=10 * 1024 * 1024):
    """Largest batch tile (multiple of 8) whose working set fits a conservative VMEM
    budget — safe against v5e's 16 MiB default scoped VMEM and v7x's 64 MiB physical
    VMEM (the scoped limit is raised explicitly in the pallas_call below)."""
    per_elem = (
        2 * l_pad * e * 2          # bf16 input tile, double-buffered by the pipeline
        + 2 * l_pad * f_pad * 4    # f32 conv accumulator (+ masked copy)
        + l_pad * f_pad * 4        # rolled tap temporary
        + 2 * f_pad * 4            # f32 pooled output tile, double-buffered
    )
    tb = max(8, (budget_bytes // per_elem) // 8 * 8)
    return int(min(tb, 1024))


@functools.partial(jax.jit, static_argnames=("kernel_size",))
def cnn_classifier_forward(token_ids, params, *, kernel_size):
    """token_ids: (B, L) int32. Returns (B, 1) float32 probabilities (eval-mode forward)."""
    conv_w = params["conv_w"]                            # (F, E, K) — PyTorch Conv1d layout
    num_filters, embed_dim, k_sz = conv_w.shape
    if k_sz != kernel_size:
        raise ValueError("kernel_size does not match conv weight shape")
    batch, seq_len = token_ids.shape
    if seq_len < kernel_size:
        raise ValueError("sequence length must be >= kernel_size")
    l_out = seq_len - kernel_size + 1

    # Embedding lookup (gather) + eval-mode dropout (identity). Done in XLA; the table
    # is cast to bf16 first so the dominant (B, L, E) stream is half-width in HBM/VMEM.
    # TODO(synk): fuse the gather into the kernel (scalar-prefetched token ids + DMA
    # gather from an ANY-space table) to avoid materializing xemb in HBM; skipped here
    # because each row is only E*2 bytes at small embedding_dim.
    xemb = jnp.take(params["embedding"].astype(jnp.bfloat16), token_ids, axis=0)

    # TPU-friendly padding: lane-dense filters, sublane-aligned sequence, batch tiling.
    f_pad = _round_up(num_filters, 128)
    l_pad = _round_up(seq_len, 16)                       # bf16 sublane packing
    tb = min(_pick_batch_tile(l_pad, embed_dim, f_pad), _round_up(batch, 8))
    b_pad = _round_up(batch, tb)
    # NOTE: for very long sequences the L axis should also be tiled (esp. on v5e);
    # here only the batch tile shrinks.

    xemb = jnp.pad(xemb, ((0, b_pad - batch), (0, l_pad - seq_len), (0, 0)))

    wconv = jnp.transpose(conv_w, (2, 1, 0)).astype(jnp.bfloat16)     # (K, E, F)
    wconv = jnp.pad(wconv, ((0, 0), (0, 0), (0, f_pad - num_filters)))
    bconv = jnp.pad(params["conv_b"].astype(jnp.float32),
                    (0, f_pad - num_filters)).reshape(1, f_pad)

    kernel = functools.partial(_cnn_pool_kernel, kernel_size=kernel_size, l_out=l_out)

    pooled = pl.pallas_call(
        kernel,
        out_shape=jax.ShapeDtypeStruct((b_pad, f_pad), jnp.float32),
        grid=(b_pad // tb,),
        in_specs=[
            pl.BlockSpec((tb, l_pad, embed_dim), lambda i: (i, 0, 0)),      # batch-tiled
            pl.BlockSpec((kernel_size, embed_dim, f_pad), lambda i: (0, 0, 0)),  # replicated
            pl.BlockSpec((1, f_pad), lambda i: (0, 0)),                      # replicated
        ],
        out_specs=pl.BlockSpec((tb, f_pad), lambda i: (i, 0)),
        compiler_params=pltpu.CompilerParams(
            dimension_semantics=("parallel",),           # pipelining + megacore on v7x
            vmem_limit_bytes=32 * 1024 * 1024,           # explicit; tile budget fits well under
        ),
    )(xemb, wconv, bconv)

    # Final fc (N=1) + sigmoid in the wrapper: keeps the kernel's output lane-dense and
    # skips a degenerate 1-column MXU matmul. Zero-padded filters/batch rows are sliced off.
    pooled = pooled[:batch, :num_filters]
    logits = jnp.dot(pooled, params["fc_w"].astype(jnp.float32).T,
                     precision=jax.lax.Precision.HIGHEST) + params["fc_b"]
    return jax.nn.sigmoid(logits)


def init_params(key, vocab_size, embedding_dim, num_filters, kernel_size):
    k_emb, k_cw, k_cb, k_fw, k_fb = jax.random.split(key, 5)
    params = {
        "embedding": jax.random.normal(
            k_emb, (vocab_size, embedding_dim), dtype=jnp.float32) * 0.1,
        # PyTorch Conv1d weight layout: (out_channels, in_channels, kernel_size)
        "conv_w": jax.random.normal(
            k_cw, (num_filters, embedding_dim, kernel_size), dtype=jnp.float32) * 0.1,
        "conv_b": jax.random.normal(k_cb, (num_filters,), dtype=jnp.float32) * 0.1,
        # PyTorch Linear weight layout: (out_features, in_features) = (1, num_filters)
        "fc_w": jax.random.normal(k_fw, (1, num_filters), dtype=jnp.float32) * 0.1,
        "fc_b": jax.random.normal(k_fb, (1,), dtype=jnp.float32) * 0.1,
    }
    return params


def _reference_forward(token_ids, params, *, kernel_size):
    """Pure-JAX reference mirroring the PyTorch eval-mode forward, with the same bf16
    rounding of the embedding/conv weights that the kernel path applies."""
    del kernel_size
    emb = params["embedding"].astype(jnp.bfloat16).astype(jnp.float32)
    cw = params["conv_w"].astype(jnp.bfloat16).astype(jnp.float32)
    x = jnp.take(emb, token_ids, axis=0)                 # (B, L, E)
    x = jnp.transpose(x, (0, 2, 1))                      # (B, E, L)
    y = jax.lax.conv_general_dilated(
        x, cw, window_strides=(1,), padding="VALID",
        dimension_numbers=("NCH", "OIH", "NCH"))
    y = y + params["conv_b"][None, :, None]
    y = jnp.maximum(y, 0.0)
    y = jnp.max(y, axis=2)                               # (B, F)
    y = jnp.dot(y, params["fc_w"].T,
                precision=jax.lax.Precision.HIGHEST) + params["fc_b"]
    return jax.nn.sigmoid(y)


if __name__ == "__main__":
    vocab_size = 100
    embedding_dim = 32
    num_filters = 32
    kernel_size = 3
    batch = 2
    seq_len = 16

    key = jax.random.PRNGKey(0)
    k_params, k_tokens = jax.random.split(key)
    params = init_params(k_params, vocab_size, embedding_dim, num_filters, kernel_size)
    token_ids = jax.random.randint(
        k_tokens, (batch, seq_len), 0, vocab_size, dtype=jnp.int32)

    out = cnn_classifier_forward(token_ids, params, kernel_size=kernel_size)
    out = jax.block_until_ready(out)

    ref = _reference_forward(token_ids, params, kernel_size=kernel_size)
    assert out.shape == (batch, 1), out.shape
    assert jnp.allclose(out, ref, atol=1e-4, rtol=1e-4), (out, ref)

    print("KERNEL_OK")
</pallas_src>

<mosaic_0001>
module attributes {stable_mosaic.version = 11 : i64} {
  func.func @_cnn_pool_kernel(%arg0: i32, %arg1: memref<8x16x32xbf16, #tpu.memory_space<vmem>>, %arg2: memref<3x32x128xbf16, #tpu.memory_space<vmem>>, %arg3: memref<1x128xf32, #tpu.memory_space<vmem>>, %arg4: memref<8x128xf32, #tpu.memory_space<vmem>>) attributes {dimension_semantics = [#tpu.dimension_semantics<parallel>], iteration_bounds = array<i64: 1>, scalar_prefetch = 0 : i64, scratch_operands = 0 : i64, tpu.core_type = #tpu.core_type<tc>, window_params = [{transform_indices = @transform_0, window_bounds = array<i64: 8, 16, 32>}, {pipeline_mode = #tpu.pipeline_mode<synchronous>, transform_indices = @transform_1, window_bounds = array<i64: 3, 32, 128>}, {pipeline_mode = #tpu.pipeline_mode<synchronous>, transform_indices = @transform_2, window_bounds = array<i64: 1, 128>}, {transform_indices = @transform_3, window_bounds = array<i64: 8, 128>}]} {
    %c0 = arith.constant 0 : index
    %c0_0 = arith.constant 0 : index
    %c0_1 = arith.constant 0 : index
    %0 = vector.load %arg1[%c0, %c0_0, %c0_1] : memref<8x16x32xbf16, #tpu.memory_space<vmem>>, vector<8x16x32xbf16>
    %1 = vector.shape_cast %0 : vector<8x16x32xbf16> to vector<128x32xbf16>
    %c0_2 = arith.constant 0 : index
    %c0_3 = arith.constant 0 : index
    %c0_4 = arith.constant 0 : index
    %2 = vector.load %arg2[%c0_2, %c0_3, %c0_4] : memref<3x32x128xbf16, #tpu.memory_space<vmem>>, vector<1x32x128xbf16>
    %3 = vector.shape_cast %2 : vector<1x32x128xbf16> to vector<32x128xbf16>
    %cst = arith.constant dense<0.000000e+00> : vector<128x128xf32>
    %4 = tpu.matmul %1, %3, %cst {dimension_numbers = #tpu.dot_dimension_numbers<[1], [0], [0], [1], [0, 0, 1, 1], [], []>} : vector<128x32xbf16>, vector<32x128xbf16>, vector<128x128xf32> -> vector<128x128xf32>
    %c1 = arith.constant 1 : index
    %c0_5 = arith.constant 0 : index
    %c0_6 = arith.constant 0 : index
    %5 = vector.load %arg2[%c1, %c0_5, %c0_6] : memref<3x32x128xbf16, #tpu.memory_space<vmem>>, vector<1x32x128xbf16>
    %6 = vector.shape_cast %5 : vector<1x32x128xbf16> to vector<32x128xbf16>
    %cst_7 = arith.constant dense<0.000000e+00> : vector<128x128xf32>
    %7 = tpu.matmul %1, %6, %cst_7 {dimension_numbers = #tpu.dot_dimension_numbers<[1], [0], [0], [1], [0, 0, 1, 1], [], []>} : vector<128x32xbf16>, vector<32x128xbf16>, vector<128x128xf32> -> vector<128x128xf32>
    %c127_i32 = arith.constant 127 : i32
    %8 = tpu.dynamic_rotate %7 by %c127_i32 dim 0 : vector<128x128xf32>, i32 -> vector<128x128xf32>
    %9 = arith.addf %4, %8 : vector<128x128xf32>
    %c2 = arith.constant 2 : index
    %c0_8 = arith.constant 0 : index
    %c0_9 = arith.constant 0 : index
    %10 = vector.load %arg2[%c2, %c0_8, %c0_9] : memref<3x32x128xbf16, #tpu.memory_space<vmem>>, vector<1x32x128xbf16>
    %11 = vector.shape_cast %10 : vector<1x32x128xbf16> to vector<32x128xbf16>
    %cst_10 = arith.constant dense<0.000000e+00> : vector<128x128xf32>
    %12 = tpu.matmul %1, %11, %cst_10 {dimension_numbers = #tpu.dot_dimension_numbers<[1], [0], [0], [1], [0, 0, 1, 1], [], []>} : vector<128x32xbf16>, vector<32x128xbf16>, vector<128x128xf32> -> vector<128x128xf32>
    %c126_i32 = arith.constant 126 : i32
    %13 = tpu.dynamic_rotate %12 by %c126_i32 dim 0 : vector<128x128xf32>, i32 -> vector<128x128xf32>
    %14 = arith.addf %9, %13 : vector<128x128xf32>
    %15 = vector.shape_cast %14 : vector<128x128xf32> to vector<8x16x128xf32>
    %16 = tpu.iota {dimensions = array<i32: 1>} : vector<8x16x128xi32>
    %c14_i32 = arith.constant 14 : i32
    %17 = vector.broadcast %c14_i32 : i32 to vector<8x16x128xi32>
    %18 = arith.cmpi slt, %16, %17 : vector<8x16x128xi32>
    %cst_11 = arith.constant 0xFF800000 : f32
    %19 = vector.broadcast %cst_11 : f32 to vector<8x16x128xf32>
    %20 = arith.select %18, %15, %19 : vector<8x16x128xi1>, vector<8x16x128xf32>
    %cst_12 = arith.constant dense<0xFF800000> : vector<8x128xf32>
    %21 = vector.multi_reduction <maximumf>, %20, %cst_12 [1] : vector<8x16x128xf32> to vector<8x128xf32>
    %c0_13 = arith.constant 0 : index
    %c0_14 = arith.constant 0 : index
    %22 = vector.load %arg3[%c0_13, %c0_14] : memref<1x128xf32, #tpu.memory_space<vmem>>, vector<1x128xf32>
    %23 = vector.broadcast %22 : vector<1x128xf32> to vector<8x128xf32>
    %24 = arith.addf %21, %23 : vector<8x128xf32>
    %cst_15 = arith.constant 0.000000e+00 : f32
    %25 = vector.broadcast %cst_15 : f32 to vector<8x128xf32>
    %26 = arith.maximumf %24, %25 : vector<8x128xf32>
    %c0_16 = arith.constant 0 : index
    %c0_17 = arith.constant 0 : index
    %27 = vector.load %arg4[%c0_16, %c0_17] : memref<8x128xf32, #tpu.memory_space<vmem>>, vector<8x128xf32>
    tpu.vector_store %arg4[%c0_16, %c0_17], %26 {strides = array<i32>} : memref<8x128xf32, #tpu.memory_space<vmem>>, vector<8x128xf32>,
    return
  }
  func.func @transform_0(%arg0: i32) -> (i32, i32, i32) {
    %c0_i32 = arith.constant 0 : i32
    %c0_i32_0 = arith.constant 0 : i32
    %c0_i32_1 = arith.constant 0 : i32
    return %arg0, %c0_i32, %c0_i32_0 : i32, i32, i32
  }
  func.func @transform_1(%arg0: i32) -> (i32, i32, i32) {
    %c0_i32 = arith.constant 0 : i32
    %c0_i32_0 = arith.constant 0 : i32
    %c0_i32_1 = arith.constant 0 : i32
    %c0_i32_2 = arith.constant 0 : i32
    return %c0_i32, %c0_i32_0, %c0_i32_1 : i32, i32, i32
  }
  func.func @transform_2(%arg0: i32) -> (i32, i32) {
    %c0_i32 = arith.constant 0 : i32
    %c0_i32_0 = arith.constant 0 : i32
    %c0_i32_1 = arith.constant 0 : i32
    return %c0_i32, %c0_i32_0 : i32, i32
  }
  func.func @transform_3(%arg0: i32) -> (i32, i32) {
    %c0_i32 = arith.constant 0 : i32
    %c0_i32_0 = arith.constant 0 : i32
    return %arg0, %c0_i32 : i32, i32
  }
}

</mosaic_0001>

<bundles_post_ra>
// kernel: cnn_classifier_forward.1
= control target key start
LH: loop header
LB: loop body
LE: loop exit
PB: predicated region body
PF: predicated region fallthrough
CT: control target
= control target key end

     0   :  { %vm92_vm0 = vcmask 261120   ;;  %v230_v14 = vlaneseq  ;;  %vm628_vm4 = vcmask 1041409   ;;  %vm631_vm5 = vcmask 1042434   ;;  %s1032_s1 = inlined_call_operand.vmem [shape: bf16[3,32,128], index: 1, kind: input, shape index: {}]   ;;  %s1033_s0 = inlined_call_operand.vmem [shape: bf16[8,16,32], index: 0, kind: input, shape index: {}]   ;;  %s1034_s2 = inlined_call_operand.vmem [shape: f32[1,128], index: 2, kind: input, shape index: {}]   ;;  %s1035_s3 = inlined_call_operand.vmem [shape: f32[8,128], index: 3, kind: output, shape index: {}]  }
   0x1   :  { %v795_v0 = vld [vmem:[%s1032_s1 + $0x10] sm:$0xff]   ;;  %v796_v1 = vld [vmem:[%s1032_s1 + $0x18] sm:$0xff]   ;;  %v797_v2 = vld [vmem:[%s1033_s0] sm:$0xff]   ;;  %vm634_vm6 = vcmask 1043459   ;;  %vm637_vm7 = vcmask 1044484   ;;  %vm640_vm8 = vcmask 1045509  }
   0x2   :  { %731 = vmatprep.subr.bf16.mxu0 %v795_v0  ;;  %791 = vmatprep.subr.bf16.mxu1 %v795_v0  ;;  %v798_v3 = vld [vmem:[%s1033_s0 + $0x20] sm:$0xff]   ;;  %v799_v4 = vld [vmem:[%s1033_s0 + $0x8] sm:$0xff]   ;;  %v803_v8 = vld [vmem:[%s1033_s0 + $0x10] sm:$0xff]   ;;  %v895_v15 = vshrl.u32 %v230_v14, 7  ;;  %vm643_vm9 = vcmask 1046534   ;;  %vm646_vm10 = vcmask 1047559  }
   0x3   :  { %732 = vmatpush3.bf16.msra.mxu0 %v795_v0  ;;  %793 = vmatpush3.bf16.msra.mxu1 %v795_v0  ;;  %v800_v5 = vld [vmem:[%s1033_s0 + $0x28] sm:$0xff]   ;;  %v801_v6 = vld [vmem:[%s1032_s1 + $0x20] sm:$0xff]   ;;  %v804_v9 = vld [vmem:[%s1033_s0 + $0x30] sm:$0xff]  }
   0x4   :  { %733 = vmatprep.subr.bf16.mxu0 %v796_v1  ;;  %792 = vmatprep.subr.bf16.mxu1 %v796_v1  ;;  %v802_v7 = vld [vmem:[%s1032_s1] sm:$0xff]   ;;  %v807_v10 = vld [vmem:[%s1032_s1 + $0x28] sm:$0xff]   ;;  %v805_v12 = vld [vmem:[%s1033_s0 + $0x18] sm:$0xff]   ;;  %vm232_vm1 = vcmp.lt.s32.totalorder %v895_v15, 7  ;;  %vm488_vm2 = vcmp.lt.s32.totalorder %v895_v15, 6 }
   0x5   :  { %735 = vmatprep.mubr.msk.bf16.mxu0 %vm92_vm0, %v797_v2  ;;  %743 = vmatprep.mubr.msk.bf16.mxu1 %vm92_vm0, %v798_v3  ;;  %v808_v11 = vld [vmem:[%s1032_s1 + $0x8] sm:$0xff]   ;;  %v806_v13 = vld [vmem:[%s1033_s0 + $0x38] sm:$0xff]  }
   0x7   :  { %734 = vmatpush3.bf16.msra.mxu0 %v796_v1  ;;  %794 = vmatpush3.bf16.msra.mxu1 %v796_v1 }
   0x8   :  { %771 = vmatprep.subr.bf16.mxu0 %v801_v6  ;;  %751 = vmatprep.subr.bf16.mxu1 %v802_v7 }
   0xa   :  { %736 = vmatmul.mubr.msk.bf16.vlgmr.msra.gmra.mrb[0].mxu0 %vm92_vm0, %v799_v4  ;;  %744 = vmatmul.mubr.msk.bf16.vlgmr.msra.gmra.mrb[0].mxu1 %vm92_vm0, %v800_v5 }
   0xb   :  { %772 = vmatpush3.bf16.msra.mxu0 %v801_v6  ;;  %752 = vmatpush3.bf16.msra.mxu1 %v802_v7 }
   0xc   :  { %739 = vmatprep.mubr.msk.bf16.mxu0 %vm92_vm0, %v803_v8  ;;  %747 = vmatprep.mubr.msk.bf16.mxu1 %vm92_vm0, %v804_v9 }
   0xd   :  { %773 = vmatprep.subr.bf16.mxu0 %v807_v10  ;;  %753 = vmatprep.subr.bf16.mxu1 %v808_v11 }
   0xf   :  { %774 = vmatpush3.bf16.msra.mxu0 %v807_v10  ;;  %754 = vmatpush3.bf16.msra.mxu1 %v808_v11 }
  0x12   :  { %740 = vmatmul.mubr.msk.bf16.gmra.mrb[4].mxu0 %vm92_vm0, %v805_v12  ;;  %748 = vmatmul.mubr.msk.bf16.gmra.mrb[4].mxu1 %vm92_vm0, %v806_v13 }
  0x13   :  { %755 = vmatprep.mubr.msk.bf16.mxu1 %vm92_vm0, %v797_v2  ;;  %775 = vmatprep.mubr.msk.bf16.mxu0 %vm92_vm0, %v797_v2 }
  0x1a   :  { %756 = vmatmul.mubr.msk.bf16.vlgmr.msra.gmra.mrb[8].mxu1 %vm92_vm0, %v799_v4  ;;  %776 = vmatmul.mubr.msk.bf16.vlgmr.msra.gmra.mrb[8].mxu0 %vm92_vm0, %v799_v4 }
  0x1b   :  { %759 = vmatprep.mubr.msk.bf16.mxu1 %vm92_vm0, %v803_v8  ;;  %779 = vmatprep.mubr.msk.bf16.mxu0 %vm92_vm0, %v803_v8  ;;  %v950_v8 = vadd.s32 8, %v895_v15 }
  0x1d   :  { %vm523_vm3 = vcmp.lt.s32.totalorder %v950_v8, 14 }
  0x22   :  { %760 = vmatmul.mubr.msk.bf16.gmra.mrb[12].mxu1 %vm92_vm0, %v805_v12  ;;  %780 = vmatmul.mubr.msk.bf16.gmra.mrb[12].mxu0 %vm92_vm0, %v805_v12 }
  0x23   :  { %763 = vmatprep.mubr.msk.bf16.mxu1 %vm92_vm0, %v798_v3  ;;  %783 = vmatprep.mubr.msk.bf16.mxu0 %vm92_vm0, %v798_v3 }
  0x2a   :  { %764 = vmatmul.mubr.msk.bf16.gmra.mrb[16].mxu1 %vm92_vm0, %v800_v5  ;;  %784 = vmatmul.mubr.msk.bf16.gmra.mrb[16].mxu0 %vm92_vm0, %v800_v5 }
  0x2b   :  { %767 = vmatprep.mubr.msk.bf16.mxu1 %vm92_vm0, %v804_v9  ;;  %787 = vmatprep.mubr.msk.bf16.mxu0 %vm92_vm0, %v804_v9 }
  0x32   :  { %768 = vmatmul.mubr.msk.bf16.gmra.mrb[20].mxu1 %vm92_vm0, %v806_v13  ;;  %788 = vmatmul.mubr.msk.bf16.gmra.mrb[20].mxu0 %vm92_vm0, %v806_v13 }
  0xdd   :  { %v737_v16 = vpop.f32.mrb[0].mxu0  ;;  %v745_v17 = vpop.f32.mrb[0].mxu1 }
  0xde   :  { %v224_v18 = vrot.slane %v745_v17, 1  ;;  %v151_v19 = vpop.f32.mrb[1].mxu0  ;;  %v183_v20 = vpop.f32.mrb[1].mxu1  ;;  %v216_v23 = vrot.slane %v737_v16, 1 }
  0xdf   :  { %v738_v21 = vpop.f32.mrb[2].mxu0  ;;  %v746_v22 = vpop.f32.mrb[2].mxu1  ;;  %v214_v28 = vrot.slane %v151_v19, 1  ;;  %v222_v29 = vrot.slane %v183_v20, 1 }
  0xe0   :  { %v217_v24 = vrot.slane %v738_v21, 1  ;;  %v225_v25 = vrot.slane %v746_v22, 1  ;;  %v154_v26 = vpop.f32.mrb[3].mxu0  ;;  %v186_v27 = vpop.f32.mrb[3].mxu1 }
  0xe1   :  { %v215_v30 = vrot.slane %v154_v26, 1  ;;  %v223_v31 = vrot.slane %v186_v27, 1 }
  0xe2   :  { %v245_v32 = vsel %vm232_vm1, %v216_v23, %v217_v24  ;;  %v902_v33 = vsel %vm232_vm1, %v224_v18, %v225_v25 }
  0xe3   :  { %v247_v34 = vsel %vm232_vm1, %v214_v28, %v215_v30  ;;  %v246_v35 = vsel %vm232_vm1, %v215_v30, %v216_v23  ;;  %v910_v36 = vsel %vm232_vm1, %v222_v29, %v223_v31  ;;  %v914_v37 = vsel %vm232_vm1, %v223_v31, %v224_v18 }
  0xe5   :  { %v741_v38 = vpop.f32.mrb[4].mxu0  ;;  %v749_v39 = vpop.f32.mrb[4].mxu1 }
  0xe6   :  { %v228_v40 = vrot.slane %v749_v39, 1  ;;  %v167_v41 = vpop.f32.mrb[5].mxu0  ;;  %v199_v42 = vpop.f32.mrb[5].mxu1  ;;  %v220_v47 = vrot.slane %v741_v38, 1 }
  0xe7   :  { %v218_v43 = vrot.slane %v167_v41, 1  ;;  %v226_v44 = vrot.slane %v199_v42, 1  ;;  %v742_v45 = vpop.f32.mrb[6].mxu0  ;;  %v750_v46 = vpop.f32.mrb[6].mxu1 }
  0xe8   :  { %v221_v48 = vrot.slane %v742_v45, 1  ;;  %v229_v49 = vrot.slane %v750_v46, 1  ;;  %v170_v50 = vpop.f32.mrb[7].mxu0  ;;  %v202_v51 = vpop.f32.mrb[7].mxu1 }
  0xe9   :  { %v219_v52 = vrot.slane %v170_v50, 1  ;;  %v227_v53 = vrot.slane %v202_v51, 1  ;;  %v244_v54 = vsel %vm232_vm1, %v217_v24, %v218_v43  ;;  %v920_v55 = vsel %vm232_vm1, %v225_v25, %v226_v44 }
  0xea   :  { %v241_v56 = vsel %vm232_vm1, %v220_v47, %v221_v48  ;;  %v240_v57 = vsel %vm232_vm1, %v221_v48, %v222_v29  ;;  %v928_v58 = vsel %vm232_vm1, %v228_v40, %v229_v49  ;;  %v932_v59 = vsel %vm232_vm1, %v229_v49, %v214_v28 }
  0xeb   :  { %v243_v60 = vsel %vm232_vm1, %v218_v43, %v219_v52  ;;  %v242_v61 = vsel %vm232_vm1, %v219_v52, %v220_v47  ;;  %v940_v62 = vsel %vm232_vm1, %v226_v44, %v227_v53  ;;  %v944_v63 = vsel %vm232_vm1, %v227_v53, %v228_v40 }
  0xed   :  { %v757_v0 = vpop.f32.mrb[8].mxu1  ;;  %v777_v1 = vpop.f32.mrb[8].mxu0 }
  0xee   :  { %v304_v2 = vadd.f32 %v757_v0, %v245_v32  ;;  %v295_v3 = vpop.f32.mrb[9].mxu1  ;;  %v946_v4 = vpop.f32.mrb[9].mxu0  ;;  %v474_v9 = vrot.slane %v777_v1, 2 }
  0xef   :  { %v296_v5 = vadd.f32 %v295_v3, %v247_v34  ;;  %v758_v6 = vpop.f32.mrb[10].mxu1  ;;  %v778_v7 = vpop.f32.mrb[10].mxu0  ;;  %v472_v14 = vrot.slane %v946_v4, 2 }
  0xf0   :  { %v307_v10 = vadd.f32 %v758_v6, %v244_v54  ;;  %v475_v11 = vrot.slane %v778_v7, 2  ;;  %v298_v12 = vpop.f32.mrb[11].mxu1  ;;  %v412_v13 = vpop.f32.mrb[11].mxu0 }
  0xf1   :  { %v299_v16 = vadd.f32 %v298_v12, %v246_v35  ;;  %v473_v17 = vrot.slane %v412_v13, 2 }
  0xf2   :  { %v501_v18 = vsel %vm488_vm2, %v474_v9, %v475_v11 }
  0xf3   :  { %v507_v19 = vadd.f32 %v501_v18, %v304_v2  ;;  %v502_v20 = vsel %vm488_vm2, %v473_v17, %v474_v9  ;;  %v503_v21 = vsel %vm488_vm2, %v472_v14, %v473_v17 }
  0xf4   :  { %v505_v22 = vadd.f32 %v503_v21, %v296_v5  ;;  %v506_v23 = vadd.f32 %v502_v20, %v299_v16 }
  0xf5   :  { %v761_v24 = vpop.f32.mrb[12].mxu1  ;;  %v781_v25 = vpop.f32.mrb[12].mxu0 }
  0xf6   :  { %v525_v26 = vsel %vm523_vm3, %v506_v23, -inf  ;;  %v320_v27 = vadd.f32 %v761_v24, %v241_v56  ;;  %v311_v28 = vpop.f32.mrb[13].mxu1  ;;  %v425_v29 = vpop.f32.mrb[13].mxu0  ;;  %v478_v38 = vrot.slane %v781_v25, 2  ;;  %v983_v24 = vld [vmem:[%s1034_s2] ss:$0 sm:$0xff] }
  0xf7   :  { %v540_v30 = vmax.f32 %v505_v22, %v525_v26  ;;  %v312_v31 = vadd.f32 %v311_v28, %v243_v60  ;;  %v476_v32 = vrot.slane %v425_v29, 2  ;;  %v762_v34 = vpop.f32.mrb[14].mxu1  ;;  %v782_v35 = vpop.f32.mrb[14].mxu0 }
  0xf8   :  { %v323_v39 = vadd.f32 %v762_v34, %v240_v57  ;;  %v479_v40 = vrot.slane %v782_v35, 2  ;;  %v314_v41 = vpop.f32.mrb[15].mxu1  ;;  %v428_v42 = vpop.f32.mrb[15].mxu0 }
  0xf9   :  { %v541_v43 = vrot.slane %v540_v30, 4  ;;  %v500_v44 = vsel %vm488_vm2, %v475_v11, %v476_v32  ;;  %v315_v45 = vadd.f32 %v314_v41, %v242_v61  ;;  %v477_v46 = vrot.slane %v428_v42, 2 }
  0xfa   :  { %v508_v47 = vadd.f32 %v500_v44, %v307_v10  ;;  %v497_v48 = vsel %vm488_vm2, %v478_v38, %v479_v40 }
  0xfb   :  { %v542_v49 = vmax.f32 %v540_v30, %v541_v43  ;;  %v511_v50 = vadd.f32 %v497_v48, %v320_v27  ;;  %v498_v51 = vsel %vm488_vm2, %v477_v46, %v478_v38  ;;  %v499_v52 = vsel %vm488_vm2, %v476_v32, %v477_v46 }
  0xfc   :  { %v527_v53 = vsel %vm523_vm3, %v508_v47, -inf  ;;  %v509_v54 = vadd.f32 %v499_v52, %v312_v31  ;;  %v510_v56 = vadd.f32 %v498_v51, %v315_v45 }
  0xfd   :  { %v543_v57 = vrot.slane %v542_v49, 2  ;;  %v547_v60 = vmax.f32 %v507_v19, %v527_v53  ;;  %v765_v61 = vpop.f32.mrb[16].mxu1  ;;  %v785_v0 = vpop.f32.mrb[16].mxu0 }
  0xfe   :  { %v529_v1 = vsel %vm523_vm3, %v510_v56, -inf  ;;  %v336_v2 = vadd.f32 %v765_v61, %v902_v33  ;;  %v327_v3 = vpop.f32.mrb[17].mxu1  ;;  %v441_v5 = vpop.f32.mrb[17].mxu0  ;;  %v482_v13 = vrot.slane %v785_v0, 2 }
  0xff   :  { %v544_v6 = vmax.f32 %v542_v49, %v543_v57  ;;  %v548_v7 = vrot.slane %v547_v60, 4  ;;  %v554_v9 = vmax.f32 %v509_v54, %v529_v1  ;;  %v328_v10 = vadd.f32 %v327_v3, %v910_v36  ;;  %v766_v11 = vpop.f32.mrb[18].mxu1  ;;  %v786_v12 = vpop.f32.mrb[18].mxu0 }
 0x100   :  { %v480_v16 = vrot.slane %v441_v5, 2  ;;  %v339_v17 = vadd.f32 %v766_v11, %v920_v55  ;;  %v483_v18 = vrot.slane %v786_v12, 2  ;;  %v330_v19 = vpop.f32.mrb[19].mxu1  ;;  %v444_v20 = vpop.f32.mrb[19].mxu0 }
 0x101   :  { %v545_v21 = vrot.slane %v544_v6, 1  ;;  %v549_v22 = vmax.f32 %v547_v60, %v548_v7  ;;  %v555_v23 = vrot.slane %v554_v9, 4  ;;  %v331_v33 = vadd.f32 %v330_v19, %v914_v37 }
 0x102   :  { %v496_v36 = vsel %vm488_vm2, %v479_v40, %v480_v16  ;;  %v493_v25 = vsel %vm488_vm2, %v482_v13, %v483_v18  ;;  %v481_v55 = vrot.slane %v444_v20, 2 }
 0x103   :  { %v546_v26 = vmax.f32 %v544_v6, %v545_v21  ;;  %v550_v27 = vrot.slane %v549_v22, 2  ;;  %v556_v28 = vmax.f32 %v554_v9, %v555_v23  ;;  %v512_v29 = vadd.f32 %v496_v36, %v323_v39 }
 0x104   :  { %v515_v30 = vadd.f32 %v493_v25, %v336_v2  ;;  %v494_v37 = vsel %vm488_vm2, %v481_v55, %v482_v13  ;;  %v495_v31 = vsel %vm488_vm2, %v480_v16, %v481_v55 }
 0x105   :  { %v603_v32 = vadd.f32 %v983_v24, %v546_v26  ;;  %v551_v34 = vmax.f32 %v549_v22, %v550_v27  ;;  %v557_v35 = vrot.slane %v556_v28, 2  ;;  %v531_v38 = vsel %vm523_vm3, %v512_v29, -inf  ;;  %v769_v40 = vpop.f32.mrb[20].mxu1  ;;  %v789_v41 = vpop.f32.mrb[20].mxu0 }
 0x106   :  { %v561_v42 = vmax.f32 %v511_v50, %v531_v38  ;;  %v513_v43 = vadd.f32 %v495_v31, %v328_v10  ;;  %v514_v39 = vadd.f32 %v494_v37, %v331_v33  ;;  %v352_v44 = vadd.f32 %v769_v40, %v928_v58  ;;  %v343_v45 = vpop.f32.mrb[21].mxu1  ;;  %v457_v46 = vpop.f32.mrb[21].mxu0 }
 0x107   :  { %v611_v47 = vmax.f32 %v603_v32, 0.0  ;;  %v552_v48 = vrot.slane %v551_v34, 1  ;;  %v558_v49 = vmax.f32 %v556_v28, %v557_v35  ;;  %v486_v51 = vrot.slane %v789_v41, 2  ;;  %v770_v52 = vpop.f32.mrb[22].mxu1  ;;  %v790_v53 = vpop.f32.mrb[22].mxu0 }
 0x108   :  { %v562_v54 = vrot.slane %v561_v42, 4  ;;  %v533_v56 = vsel %vm523_vm3, %v514_v39, -inf  ;;  %v344_v57 = vadd.f32 %v343_v45, %v940_v62  ;;  %v484_v50 = vrot.slane %v457_v46, 2  ;;  %v346_v60 = vpop.f32.mrb[23].mxu1  ;;  %v460_v61 = vpop.f32.mrb[23].mxu0 }
 0x109   :  { %v553_v0 = vmax.f32 %v551_v34, %v552_v48  ;;  %v559_v58 = vrot.slane %v558_v49, 1  ;;  %v568_v1 = vmax.f32 %v513_v43, %v533_v56  ;;  %v355_v2 = vadd.f32 %v770_v52, %v932_v59 }
 0x10a   :  { %v563_v3 = vmax.f32 %v561_v42, %v562_v54  ;;  %v492_v5 = vsel %vm488_vm2, %v483_v18, %v484_v50  ;;  %v487_v6 = vrot.slane %v790_v53, 2  ;;  %v347_v7 = vadd.f32 %v346_v60, %v944_v63 }
 0x10b   :  { %v604_v9 = vadd.f32 %v983_v24, %v553_v0  ;;  %v560_v10 = vmax.f32 %v558_v49, %v559_v58  ;;  %v569_v11 = vrot.slane %v568_v1, 4  ;;  %v516_v62 = vadd.f32 %v492_v5, %v339_v17 }
 0x10c   :  { %v564_v12 = vrot.slane %v563_v3, 2  ;;  %v489_v13 = vsel %vm488_vm2, %v486_v51, %v487_v6  ;;  %v504_v59 = vsel %vm488_vm2, %v487_v6, %v472_v14  ;;  %v485_v16 = vrot.slane %v460_v61, 2 }
 0x10d   :  { %v612_v19 = vmax.f32 %v604_v9, 0.0  ;;  %v605_v18 = vadd.f32 %v983_v24, %v560_v10  ;;  %v570_v20 = vmax.f32 %v568_v1, %v569_v11  ;;  %v535_v63 = vsel %vm523_vm3, %v516_v62, -inf }
 0x10e   :  { %v565_v21 = vmax.f32 %v563_v3, %v564_v12  ;;  %v575_v22 = vmax.f32 %v515_v30, %v535_v63  ;;  %v519_v17 = vadd.f32 %v489_v13, %v352_v44  ;;  %v520_v23 = vadd.f32 %v504_v59, %v355_v2 }
 0x10f   :  { %v627_v33 = vrot.slane %v612_v19, 7  ;;  %v613_v36 = vmax.f32 %v605_v18, 0.0  ;;  %v571_v25 = vrot.slane %v570_v20, 2  ;;  %v490_v4 = vsel %vm488_vm2, %v485_v16, %v486_v51 }
 0x110   :  { %v566_v55 = vrot.slane %v565_v21, 1  ;;  %v576_v14 = vrot.slane %v575_v22, 4  ;;  %v539_v26 = vsel %vm523_vm3, %v520_v23, -inf  ;;  %v491_v27 = vsel %vm488_vm2, %v484_v50, %v485_v16 }
 0x111   :  { %v629_v28 = vsel %vm628_vm4, %v627_v33, %v611_v47  ;;  %v630_v29 = vrot.slane %v613_v36, 6  ;;  %v572_v30 = vmax.f32 %v570_v20, %v571_v25  ;;  %v589_v37 = vmax.f32 %v519_v17, %v539_v26 }
 0x112   :  { %v567_v31 = vmax.f32 %v565_v21, %v566_v55  ;;  %v577_v32 = vmax.f32 %v575_v22, %v576_v14  ;;  %v517_v34 = vadd.f32 %v491_v27, %v344_v57  ;;  %v518_v35 = vadd.f32 %v490_v4, %v347_v7 }
 0x113   :  { %v632_v38 = vsel %vm631_vm5, %v630_v29, %v629_v28  ;;  %v573_v40 = vrot.slane %v572_v30, 1  ;;  %v590_v41 = vrot.slane %v589_v37, 4 }
 0x114   :  { %v606_v42 = vadd.f32 %v983_v24, %v567_v31  ;;  %v578_v43 = vrot.slane %v577_v32, 2  ;;  %v537_v15 = vsel %vm523_vm3, %v518_v35, -inf }
 0x115   :  { %v574_v39 = vmax.f32 %v572_v30, %v573_v40  ;;  %v591_v44 = vmax.f32 %v589_v37, %v590_v41  ;;  %v582_v45 = vmax.f32 %v517_v34, %v537_v15 }
 0x116   :  { %v614_v46 = vmax.f32 %v606_v42, 0.0  ;;  %v579_v47 = vmax.f32 %v577_v32, %v578_v43 }
 0x117   :  { %v607_v48 = vadd.f32 %v983_v24, %v574_v39  ;;  %v592_v49 = vrot.slane %v591_v44, 2  ;;  %v583_v51 = vrot.slane %v582_v45, 4 }
 0x118   :  { %v633_v52 = vrot.slane %v614_v46, 5  ;;  %v580_v53 = vrot.slane %v579_v47, 1 }
 0x119   :  { %v615_v54 = vmax.f32 %v607_v48, 0.0  ;;  %v593_v56 = vmax.f32 %v591_v44, %v592_v49  ;;  %v584_v57 = vmax.f32 %v582_v45, %v583_v51 }
 0x11a   :  { %v635_v50 = vsel %vm634_vm6, %v633_v52, %v632_v38  ;;  %v581_v60 = vmax.f32 %v579_v47, %v580_v53 }
 0x11b   :  { %v636_v8 = vrot.slane %v615_v54, 4  ;;  %v594_v61 = vrot.slane %v593_v56, 1  ;;  %v585_v0 = vrot.slane %v584_v57, 2 }
 0x11c   :  { %v608_v58 = vadd.f32 %v983_v24, %v581_v60 }
 0x11d   :  { %v638_v1 = vsel %vm637_vm7, %v636_v8, %v635_v50  ;;  %v595_v2 = vmax.f32 %v593_v56, %v594_v61  ;;  %v586_v3 = vmax.f32 %v584_v57, %v585_v0 }
 0x11e   :  { %v616_v5 = vmax.f32 %v608_v58, 0.0 }
 0x11f   :  { %v587_v6 = vrot.slane %v586_v3, 1  ;;  %v610_v9 = vadd.f32 %v983_v24, %v595_v2 }
 0x120   :  { %v639_v7 = vrot.slane %v616_v5, 3 }
 0x121   :  { %v588_v10 = vmax.f32 %v586_v3, %v587_v6  ;;  %v618_v12 = vmax.f32 %v610_v9, 0.0 }
 0x122   :  { %v641_v11 = vsel %vm640_vm8, %v639_v7, %v638_v1 }
 0x123   :  { %v609_v62 = vadd.f32 %v983_v24, %v588_v10  ;;  %v645_v16 = vrot.slane %v618_v12, 1 }
 0x125   :  { %v617_v13 = vmax.f32 %v609_v62, 0.0 }
 0x127   :  { %v642_v59 = vrot.slane %v617_v13, 2 }
 0x129   :  { %v644_v19 = vsel %vm643_vm9, %v642_v59, %v641_v11 }
 0x12a   :  { %v647_v18 = vsel %vm646_vm10, %v645_v16, %v644_v19 }
 0x12b   :  { %649 = vst [vmem:[%s1035_s3] sm:$0xff] %v647_v18 }

</bundles_post_ra>
